<compile_context>
chip_gen: v5e
topology: v5e:2x2
jax: 0.10.0
libtpu: 0.0.40
codegen_flags: <defaults>
</compile_context>

<pallas_src>
import jax
import jax.numpy as jnp
from jax.experimental import pallas as pl
from jax.experimental.pallas import tpu as pltpu


def _round_up(x: int, m: int) -> int:
    return ((x + m - 1) // m) * m


def attention_kernel(img_ref, hid_ref, we_ref, wd_ref, b_ref, wf_ref, bf_ref, out_ref):
    """One batch tile: (TB, C) & (TB, H) inputs -> lane-dense (1, TB) attention scores."""
    # Two small MXU matmuls with f32 accumulation (memory-bound kernel; f32 feeds are
    # free in wall-clock and avoid bf16 rounding flipping the ReLU near zero).
    act = jnp.dot(img_ref[...], we_ref[...], preferred_element_type=jnp.float32)
    act = act + jnp.dot(hid_ref[...], wd_ref[...], preferred_element_type=jnp.float32)
    # Fused bias add + ReLU in f32 on the VPU.
    act = jnp.maximum(act + b_ref[...], 0.0)                                   # (TB, A)
    # Linear(A -> 1) as a VPU multiply + lane reduction (skips a nearly-empty N=1 MXU
    # pass), then an XLU transpose so the store is a single lane-dense (1, TB) row
    # instead of TB/8 masked partial stores.
    col = jnp.sum(act * wf_ref[...], axis=-1, keepdims=True) + bf_ref[0, 0]    # (TB, 1)
    out_ref[...] = jnp.transpose(col).astype(out_ref.dtype)                    # (1, TB)


def attention_forward(img, hidden_state, params, *, min_pallas_batch=256):
    """img: (B, C) f32, hidden_state: (B, H) f32 -> attn: (B, 1) f32."""
    w_enc, b_enc, w_dec, b_dec, w_full, b_full = params
    B, C = img.shape
    H = hidden_state.shape[1]
    A = w_enc.shape[1]

    if B < min_pallas_batch:
        # Tiny-batch fast path (perf review item): the whole problem is a few KiB and
        # launch/fixed-overhead bound; let XLA fuse the three linears directly.
        return (jnp.maximum(img @ w_enc + b_enc + hidden_state @ w_dec + b_dec, 0.0)
                @ w_full + b_full)

    # Tiny grid-invariant operands (layout plumbing only; no activation-stream copies).
    b_fused = (b_enc + b_dec).reshape(1, A).astype(jnp.float32)   # (1, A)
    wf_row = jnp.transpose(w_full).astype(jnp.float32)            # (1, A)
    bf = b_full.reshape(1, 1).astype(jnp.float32)                 # (1, 1) -> SMEM

    # ---- batch tiling ---------------------------------------------------------------
    # Large tiles (multiple of 16 rows); cap so the grid has >= 2 steps whenever B
    # allows it, so the "parallel" batch axis shards across both TensorCores on v7x.
    TB_MAX = 2048
    if B < 32:
        TB = B                      # one exact full-array block (always a legal layout)
    else:
        TB = min(TB_MAX, _round_up(pl.cdiv(B, 2), 16))
        # Keep double-buffered input tiles comfortably inside scoped VMEM for large C/H.
        bytes_per_row = 4 * (C + H)
        TB = min(TB, max(16, ((8 << 20) // (2 * bytes_per_row)) // 16 * 16))
    num_tiles = pl.cdiv(B, TB)

    out = pl.pallas_call(
        attention_kernel,
        # Lane-dense output: one (1, TB) row per grid step; reshaped to (B, 1) below.
        out_shape=jax.ShapeDtypeStruct((num_tiles, 1, TB), jnp.float32),
        grid=(num_tiles,),
        in_specs=[
            pl.BlockSpec((TB, C), lambda i: (i, 0)),             # img tile    (pipelined)
            pl.BlockSpec((TB, H), lambda i: (i, 0)),             # hidden tile (pipelined)
            pl.BlockSpec((C, A), lambda i: (0, 0)),              # W_enc       (resident)
            pl.BlockSpec((H, A), lambda i: (0, 0)),              # W_dec       (resident)
            pl.BlockSpec((1, A), lambda i: (0, 0)),              # b_enc+b_dec (resident)
            pl.BlockSpec((1, A), lambda i: (0, 0)),              # w_full row  (resident)
            pl.BlockSpec(memory_space=pltpu.MemorySpace.SMEM),   # b_full scalar
        ],
        out_specs=pl.BlockSpec((None, 1, TB), lambda i: (i, 0, 0)),
        compiler_params=pltpu.CompilerParams(
            dimension_semantics=("parallel",),
            vmem_limit_bytes=32 << 20,
        ),
    )(img, hidden_state, w_enc, w_dec, b_fused, wf_row, bf)

    # Only the trailing (ragged) tile contains padded rows; flattening keeps the first
    # B rows valid, so a slice discards the garbage.
    return out.reshape(num_tiles * TB)[:B].reshape(B, 1)


def init_params(key, cnn_feature_size, hidden_size, attention_dim):
    """Deterministic synthetic init (shapes match nn.Linear layers, weights pre-transposed)."""
    k = jax.random.split(key, 6)
    scale = 0.05
    # stored as (in_features, out_features) == PyTorch weight transposed
    w_enc = scale * jax.random.normal(k[0], (cnn_feature_size, attention_dim), jnp.float32)
    b_enc = scale * jax.random.normal(k[1], (1, attention_dim), jnp.float32)
    w_dec = scale * jax.random.normal(k[2], (hidden_size, attention_dim), jnp.float32)
    b_dec = scale * jax.random.normal(k[3], (1, attention_dim), jnp.float32)
    w_full = scale * jax.random.normal(k[4], (attention_dim, 1), jnp.float32)
    b_full = scale * jax.random.normal(k[5], (1, 1), jnp.float32)
    return (w_enc, b_enc, w_dec, b_dec, w_full, b_full)


def _ref_forward(img, hid, params):
    w_enc, b_enc, w_dec, b_dec, w_full, b_full = params
    return jnp.maximum(img @ w_enc + b_enc + hid @ w_dec + b_dec, 0.0) @ w_full + b_full


if __name__ == "__main__":
    cnn_feature_size = 32
    hidden_size = 32
    attention_dim = 64

    key = jax.random.PRNGKey(0)
    k_img, k_hid, k_img2, k_hid2, k_par = jax.random.split(key, 5)
    params = init_params(k_par, cnn_feature_size, hidden_size, attention_dim)

    # 1) Small demo batch: single exact tile (grid = 1).  min_pallas_batch=0 forces the
    #    Pallas path so the kernel itself is exercised at demo size.
    batch = 8
    img = jax.random.normal(k_img, (batch, cnn_feature_size), jnp.float32)
    hidden_state = jax.random.normal(k_hid, (batch, hidden_size), jnp.float32)
    attn = attention_forward(img, hidden_state, params, min_pallas_batch=0)
    jax.block_until_ready(attn)
    assert attn.shape == (batch, 1)
    assert jnp.allclose(attn, _ref_forward(img, hidden_state, params), atol=1e-2, rtol=1e-2)

    # 2) Multi-tile path: 2 grid steps, ragged trailing tile, lane-dense output rows.
    batch2 = 40
    img2 = jax.random.normal(k_img2, (batch2, cnn_feature_size), jnp.float32)
    hidden_state2 = jax.random.normal(k_hid2, (batch2, hidden_size), jnp.float32)
    attn2 = attention_forward(img2, hidden_state2, params, min_pallas_batch=0)
    jax.block_until_ready(attn2)
    assert attn2.shape == (batch2, 1)
    assert jnp.allclose(attn2, _ref_forward(img2, hidden_state2, params), atol=1e-2, rtol=1e-2)

    print("KERNEL_OK")
</pallas_src>

<mosaic_0001>
module attributes {stable_mosaic.version = 11 : i64} {
  func.func @attention_kernel(%arg0: i32, %arg1: memref<8x32xf32, #tpu.memory_space<vmem>>, %arg2: memref<8x32xf32, #tpu.memory_space<vmem>>, %arg3: memref<32x64xf32, #tpu.memory_space<vmem>>, %arg4: memref<32x64xf32, #tpu.memory_space<vmem>>, %arg5: memref<1x64xf32, #tpu.memory_space<vmem>>, %arg6: memref<1x64xf32, #tpu.memory_space<vmem>>, %arg7: memref<1x1xf32, #tpu.memory_space<smem>>, %arg8: memref<1x1x8xf32, #tpu.memory_space<vmem>>) attributes {dimension_semantics = [#tpu.dimension_semantics<parallel>], iteration_bounds = array<i64: 1>, scalar_prefetch = 0 : i64, scratch_operands = 0 : i64, tpu.core_type = #tpu.core_type<tc>, window_params = [{transform_indices = @transform_0, window_bounds = array<i64: 8, 32>}, {transform_indices = @transform_1, window_bounds = array<i64: 8, 32>}, {pipeline_mode = #tpu.pipeline_mode<synchronous>, transform_indices = @transform_2, window_bounds = array<i64: 32, 64>}, {pipeline_mode = #tpu.pipeline_mode<synchronous>, transform_indices = @transform_3, window_bounds = array<i64: 32, 64>}, {pipeline_mode = #tpu.pipeline_mode<synchronous>, transform_indices = @transform_4, window_bounds = array<i64: 1, 64>}, {pipeline_mode = #tpu.pipeline_mode<synchronous>, transform_indices = @transform_5, window_bounds = array<i64: 1, 64>}, {transform_indices = @transform_6, window_bounds = array<i64: 1, 1>}, {transform_indices = @transform_7, window_bounds = array<i64: 1, 1, 8>}]} {
    %c0 = arith.constant 0 : index
    %c0_0 = arith.constant 0 : index
    %0 = vector.load %arg1[%c0, %c0_0] : memref<8x32xf32, #tpu.memory_space<vmem>>, vector<8x32xf32>
    %c0_1 = arith.constant 0 : index
    %c0_2 = arith.constant 0 : index
    %1 = vector.load %arg3[%c0_1, %c0_2] : memref<32x64xf32, #tpu.memory_space<vmem>>, vector<32x64xf32>
    %cst = arith.constant dense<0.000000e+00> : vector<8x64xf32>
    %2 = tpu.matmul %0, %1, %cst {dimension_numbers = #tpu.dot_dimension_numbers<[1], [0], [0], [1], [0, 0, 1, 1], [], []>} : vector<8x32xf32>, vector<32x64xf32>, vector<8x64xf32> -> vector<8x64xf32>
    %c0_3 = arith.constant 0 : index
    %c0_4 = arith.constant 0 : index
    %3 = vector.load %arg2[%c0_3, %c0_4] : memref<8x32xf32, #tpu.memory_space<vmem>>, vector<8x32xf32>
    %c0_5 = arith.constant 0 : index
    %c0_6 = arith.constant 0 : index
    %4 = vector.load %arg4[%c0_5, %c0_6] : memref<32x64xf32, #tpu.memory_space<vmem>>, vector<32x64xf32>
    %cst_7 = arith.constant dense<0.000000e+00> : vector<8x64xf32>
    %5 = tpu.matmul %3, %4, %cst_7 {dimension_numbers = #tpu.dot_dimension_numbers<[1], [0], [0], [1], [0, 0, 1, 1], [], []>} : vector<8x32xf32>, vector<32x64xf32>, vector<8x64xf32> -> vector<8x64xf32>
    %6 = arith.addf %2, %5 : vector<8x64xf32>
    %c0_8 = arith.constant 0 : index
    %c0_9 = arith.constant 0 : index
    %7 = vector.load %arg5[%c0_8, %c0_9] : memref<1x64xf32, #tpu.memory_space<vmem>>, vector<1x64xf32>
    %8 = vector.broadcast %7 : vector<1x64xf32> to vector<8x64xf32>
    %9 = arith.addf %6, %8 : vector<8x64xf32>
    %cst_10 = arith.constant 0.000000e+00 : f32
    %10 = vector.broadcast %cst_10 : f32 to vector<8x64xf32>
    %11 = arith.maximumf %9, %10 : vector<8x64xf32>
    %c0_11 = arith.constant 0 : index
    %c0_12 = arith.constant 0 : index
    %12 = vector.load %arg6[%c0_11, %c0_12] : memref<1x64xf32, #tpu.memory_space<vmem>>, vector<1x64xf32>
    %13 = vector.broadcast %12 : vector<1x64xf32> to vector<8x64xf32>
    %14 = arith.mulf %11, %13 : vector<8x64xf32>
    %cst_13 = arith.constant dense<0.000000e+00> : vector<8xf32>
    %15 = vector.multi_reduction <add>, %14, %cst_13 [1] : vector<8x64xf32> to vector<8xf32>
    %16 = vector.shape_cast %15 : vector<8xf32> to vector<8x1xf32>
    %c0_14 = arith.constant 0 : index
    %c0_15 = arith.constant 0 : index
    %17 = memref.load %arg7[%c0_14, %c0_15] : memref<1x1xf32, #tpu.memory_space<smem>>
    %18 = vector.broadcast %17 : f32 to vector<8x1xf32>
    %19 = arith.addf %16, %18 : vector<8x1xf32>
    %20 = tpu.transpose %19, [1, 0] : vector<8x1xf32> -> vector<1x8xf32>
    %c0_16 = arith.constant 0 : index
    %c0_17 = arith.constant 0 : index
    %c0_18 = arith.constant 0 : index
    %21 = vector.load %arg8[%c0_16, %c0_17, %c0_18] : memref<1x1x8xf32, #tpu.memory_space<vmem>>, vector<1x1x8xf32>
    %22 = vector.shape_cast %21 : vector<1x1x8xf32> to vector<1x8xf32>
    %23 = vector.shape_cast %20 : vector<1x8xf32> to vector<1x1x8xf32>
    tpu.vector_store %arg8[%c0_16, %c0_17, %c0_18], %23 {strides = array<i32>} : memref<1x1x8xf32, #tpu.memory_space<vmem>>, vector<1x1x8xf32>,
    return
  }
  func.func @transform_0(%arg0: i32) -> (i32, i32) {
    %c0_i32 = arith.constant 0 : i32
    %c0_i32_0 = arith.constant 0 : i32
    return %arg0, %c0_i32 : i32, i32
  }
  func.func @transform_1(%arg0: i32) -> (i32, i32) {
    %c0_i32 = arith.constant 0 : i32
    %c0_i32_0 = arith.constant 0 : i32
    return %arg0, %c0_i32 : i32, i32
  }
  func.func @transform_2(%arg0: i32) -> (i32, i32) {
    %c0_i32 = arith.constant 0 : i32
    %c0_i32_0 = arith.constant 0 : i32
    %c0_i32_1 = arith.constant 0 : i32
    return %c0_i32, %c0_i32_0 : i32, i32
  }
  func.func @transform_3(%arg0: i32) -> (i32, i32) {
    %c0_i32 = arith.constant 0 : i32
    %c0_i32_0 = arith.constant 0 : i32
    %c0_i32_1 = arith.constant 0 : i32
    return %c0_i32, %c0_i32_0 : i32, i32
  }
  func.func @transform_4(%arg0: i32) -> (i32, i32) {
    %c0_i32 = arith.constant 0 : i32
    %c0_i32_0 = arith.constant 0 : i32
    %c0_i32_1 = arith.constant 0 : i32
    return %c0_i32, %c0_i32_0 : i32, i32
  }
  func.func @transform_5(%arg0: i32) -> (i32, i32) {
    %c0_i32 = arith.constant 0 : i32
    %c0_i32_0 = arith.constant 0 : i32
    %c0_i32_1 = arith.constant 0 : i32
    return %c0_i32, %c0_i32_0 : i32, i32
  }
  func.func @transform_6(%arg0: i32) -> (i32, i32) {
    %c0_i32 = arith.constant 0 : i32
    %c0_i32_0 = arith.constant 0 : i32
    %c0_i32_1 = arith.constant 0 : i32
    return %c0_i32, %c0_i32_0 : i32, i32
  }
  func.func @transform_7(%arg0: i32) -> (i32, i32, i32) {
    %c0_i32 = arith.constant 0 : i32
    %c0_i32_0 = arith.constant 0 : i32
    %c0_i32_1 = arith.constant 0 : i32
    return %arg0, %c0_i32, %c0_i32_0 : i32, i32, i32
  }
}

</mosaic_0001>

<bundles_post_ra>
// kernel: tpu_custom_call.1
= control target key start
LH: loop header
LB: loop body
LE: loop exit
PB: predicated region body
PF: predicated region fallthrough
CT: control target
= control target key end

     0   :  { %13 = vsyncpa [#allocation4], 0  ;;  %s426_s0 = inlined_call_operand.hbm [shape: f32[8,32], index: 0, kind: input, shape index: {}]   ;;  %s427_s1 = inlined_call_operand.hbm [shape: f32[8,32], index: 1, kind: input, shape index: {}]   ;;  %s428_s2 = inlined_call_operand.hbm [shape: f32[32,64], index: 2, kind: input, shape index: {}]   ;;  %s429_s3 = inlined_call_operand.hbm [shape: f32[32,64], index: 3, kind: input, shape index: {}]   ;;  %s430_s4 = inlined_call_operand.vmem [shape: f32[1,64], index: 4, kind: input, shape index: {}]   ;;  %s431_s5 = inlined_call_operand.vmem [shape: f32[1,64], index: 5, kind: input, shape index: {}]   ;;  %s432_s6 = inlined_call_operand.<no memory space> [shape: f32[1,1], index: 6, kind: input, shape index: {}]   ;;  %s433_s7 = inlined_call_operand.hbm [shape: f32[1,1,8], index: 7, kind: output, shape index: {}]  }
   0x1   :  { %14 = vsyncpa [#allocation7], 0 }
   0x2   :  { %15 = vsyncpa [#allocation10], 0  ;;  %s33_s26 = sshll.u32 %s427_s1, 4  ;;  %s34_s26 = int_to_ptr.hbm [resolvable:$true] %s33_s26 }
   0x3   :  { %16 = vsyncpa [#allocation5], 0  ;;  %s355_s27 = smov [#allocation6]   ;;  %s22_s8 = sshll.u32 %s426_s0, 4  ;;  %s23_s8 = int_to_ptr.hbm [resolvable:$true] %s22_s8 }
   0x4   :  { %s35_s28 = sshll.u32 %s355_s27, 4  ;;  %s356_s9 = smov [#allocation3]   ;;  %s36_s28 = int_to_ptr.vmem [resolvable:$true] %s35_s28 }
   0x5   :  { %38 = dma.hbm_to_vmem [thread:$0]  %s34_s26, 128, %s36_s28, [#allocation7]  }
   0x6   :  { %s24_s10 = sshll.u32 %s356_s9, 4  ;;  %s43_s13 = sshll.u32 %s428_s2, 4  ;;  %s25_s10 = int_to_ptr.vmem [resolvable:$true] %s24_s10  ;;  %s44_s13 = int_to_ptr.hbm [resolvable:$true] %s43_s13 }
   0x7   :  { %27 = dma.hbm_to_vmem [thread:$0]  %s23_s8, 128, %s25_s10, [#allocation4]  }
   0x8   :  { %s357_s1 = smov [#allocation8]   ;;  %s56_s17 = sshll.u32 %s429_s3, 4  ;;  %s57_s17 = int_to_ptr.hbm [resolvable:$true] %s56_s17 }
   0x9   :  { %s45_s14 = sshll.u32 %s357_s1, 4  ;;  %s358_s18 = smov 128   ;;  %s46_s14 = int_to_ptr.vmem [resolvable:$true] %s45_s14 }
   0xa   :  { %s359_s0 = smov 8   ;;  %s360_s19 = smov [#allocation9]  }
   0xb   :  { %51 = dma.hbm_to_vmem [thread:$0]  %s44_s13, 512, %s46_s14, [#allocation7], %s358_s18, %s358_s18, %s359_s0  }
   0xc   :  { %s58_s20 = sshll.u32 %s360_s19, 4  ;;  %s59_s20 = int_to_ptr.vmem [resolvable:$true] %s58_s20 }
   0xd   :  { %64 = dma.hbm_to_vmem [thread:$0]  %s57_s17, 512, %s59_s20, [#allocation10], %s358_s18, %s358_s18, %s359_s0  }
   0xe   :  { %347 = dma.done.wait [#allocation4], 128  }
   0xf   :  { %348 = vsyncadd [#allocation4], 4294967168 }
  0x10   :  { %349 = dma.done.wait [#allocation7], 640  }
  0x11   :  { %350 = vsyncadd [#allocation7], 4294966656 }
  0x12   :  { %351 = dma.done.wait [#allocation10], 512  }
  0x13   :  { %352 = vsyncadd [#allocation10], 4294966784  ;;  %v96_v0 = vld [vmem:[#allocation9 + $0x18] sm:$0xff]  ;;  %v95_v2 = vld [vmem:[#allocation9 + $0x10] sm:$0xff]  ;;  %vm97_vm0 = vcmask 261120   ;;  %vm155_vm1 = vcmask 523264   ;;  %v160_v19 = vstv %s432_s6 }
  0x14   :  { %v91_v1 = vld [vmem:[#allocation8 + $0x18] sm:$0xff]  ;;  %113 = vmatpush.msra.mxu0 %v96_v0  ;;  %v90_v3 = vld [vmem:[#allocation8 + $0x10] sm:$0xff]  ;;  %v94_v4 = vld [vmem:[#allocation9 + $0x8] sm:$0xff]  ;;  %s203_s28 = sshll.u32 %s433_s7, 4  ;;  %vm194_vm2 = vcmask 57344   ;;  %s204_s28 = int_to_ptr.hbm [resolvable:$true] %s203_s28 }
  0x15   :  { %136 = vmatpush.msra.mxu1 %v91_v1  ;;  %v89_v5 = vld [vmem:[#allocation8 + $0x8] sm:$0xff]  ;;  %v93_v6 = vld [vmem:[#allocation9] sm:$0xff]  ;;  %v92_v8 = vld [vmem:[#allocation6] sm:$0xff] }
  0x16   :  { %114 = vmatpush.msra.mxu0 %v95_v2  ;;  %v88_v7 = vld [vmem:[#allocation8] sm:$0xff]  ;;  %v87_v9 = vld [vmem:[#allocation3] sm:$0xff] }
  0x17   :  { %137 = vmatpush.msra.mxu1 %v90_v3  ;;  %v225_v10 = vld [vmem:[%s430_s4] ss:$0 sm:$0xff]  ;;  %s361_s4 = smov [#allocation11]  }
  0x18   :  { %115 = vmatpush.msra.mxu0 %v94_v4  ;;  %v226_v15 = vld [vmem:[%s431_s5] ss:$0 sm:$0xff]  ;;  %s201_s25 = sshll.u32 %s361_s4, 4  ;;  %s202_s25 = int_to_ptr.vmem [resolvable:$true] %s201_s25 }
  0x19   :  { %138 = vmatpush.msra.mxu1 %v89_v5 }
  0x1a   :  { %116 = vmatpush.msra.mxu0 %v93_v6 }
  0x1b   :  { %139 = vmatpush.msra.mxu1 %v88_v7  ;;  %215 = vmatmul.msk.f32.vlgmr.msra.gmra.mxu0 %vm97_vm0, %v92_v8 }
  0x1c   :  { %216 = vmatmul.msk.f32.vlgmr.msra.gmra.mxu1 %vm97_vm0, %v87_v9 }
  0x98   :  { %v118_v11 = vpop.f32.mrf.mxu0 }
  0x99   :  { %v141_v12 = vpop.f32.mrf.mxu1 }
  0x9a   :  { %v142_v13 = vadd.f32 %v141_v12, %v118_v11 }
  0x9c   :  { %v148_v14 = vadd.f32 %v225_v10, %v142_v13 }
  0x9e   :  { %v149_v16 = vmax.f32 %v148_v14, 0.0 }
  0xa0   :  { %v154_v17 = vmul.f32 %v226_v15, %v149_v16 }
  0xa2   :  { %v156_v18 = vsel %vm155_vm1, %v154_v17, 0.0 }
  0xa3   :  { %157 = vadd.xlane.f32.xlu0 %v156_v18 }
 0x116   :  { %v158_v20 = vpop.xlane.xlu0 %157 }
 0x117   :  { %v161_v21 = vadd.f32 %v160_v19, %v158_v20 }
 0x119   :  { %162 = vxpose.xlu0.b32.start.end [1/1] (short) (narrow) %v161_v21, 8 }
 0x1bd   :  { %v178_v22 = vpop.trf.xlu0 }
 0x1be   :  { %195 = vst.msk [vmem:[#allocation11] sm:$0x1] %vm194_vm2, %v178_v22 }
 0x1bf   :  { %206 = dma.vmem_to_hbm [thread:$0]  %s202_s25, 16, %s204_s28, [#allocation5]  }
 0x1c0   :  { %353 = dma.done.wait [#allocation5], 16  }
 0x1c1   :  { %354 = vsyncadd [#allocation5], 4294967280 }
 0x1c2   :  { %211 = vsyncpa [#allocation4], 1 }
 0x1c3   :  { %212 = vsyncpa [#allocation7], 1 }
 0x1c4   :  { %213 = vsyncpa [#allocation10], 1 }
 0x1c5   :  { %214 = vsyncpa [#allocation5], 1 }

</bundles_post_ra>
